<compile_context>
chip_gen: v7x
topology: tpu7x:2x2x1
jax: 0.10.0
libtpu: 0.0.40
codegen_flags: <defaults>
</compile_context>

<pallas_src>
import functools

import jax
import jax.numpy as jnp
from jax.experimental import pallas as pl
from jax.experimental.pallas import tpu as pltpu

_SUBLANE = 8
_LANE = 128


def _small_c_kernel(xt_ref, yt_ref, o_ref, *, a_over_n, b_over_n, w0, w1,
                    n_valid, tiles_per_split):
    """Lane-dense path: xt is (C, TN) (classes on sublanes, samples on lanes)."""
    i = pl.program_id(0)
    j = pl.program_id(1)

    @pl.when(j == 0)
    def _():
        o_ref[...] = jnp.zeros_like(o_ref)

    xt = xt_ref[...].astype(jnp.float32)           # (C, TN)
    y = yt_ref[...]                                # (1, TN) int32
    C, TN = xt.shape

    col0 = (i * tiles_per_split + j) * TN
    col = col0 + jax.lax.broadcasted_iota(jnp.int32, (1, TN), 1)
    valid = col < n_valid                          # (1, TN)

    # log-sum-exp over the (tiny) class axis — per-lane, no cross-lane XLU reduce.
    m = jnp.max(xt, axis=0, keepdims=True)                                  # (1, TN)
    lse = jnp.log(jnp.sum(jnp.exp(xt - m), axis=0, keepdims=True)) + m      # (1, TN)

    # picked = x[y[n], n] via one-hot over the class (sublane) axis.
    cls = jax.lax.broadcasted_iota(jnp.int32, (C, TN), 0)
    onehot = (cls == y).astype(jnp.float32)
    picked = jnp.sum(xt * onehot, axis=0, keepdims=True)                    # (1, TN)
    ce_per = lse - picked

    # Weighted L1 on the last-class logit.
    yf = y.astype(jnp.float32)
    t = jnp.abs(xt[C - 1:C, :] - yf)
    l1_per = jnp.where(yf < 1.0, t * w0, t * w1)

    zero = jnp.zeros_like(ce_per)
    ce_sum = jnp.sum(jnp.where(valid, ce_per, zero), axis=1, keepdims=True)  # (1,1)
    l1_sum = jnp.sum(jnp.where(valid, l1_per, zero), axis=1, keepdims=True)  # (1,1)
    contrib = a_over_n * ce_sum + b_over_n * l1_sum                          # (1,1)
    o_ref[...] += jnp.broadcast_to(contrib, o_ref.shape)


def _rows_kernel(x_ref, y_ref, o_ref, *, a_over_n, b_over_n, w0, w1,
                 n_valid, tiles_per_split):
    """General path: x is (TM, C) (rows = samples, lanes = classes)."""
    # TODO(synk): for vocab-scale C, also tile the class axis with an online
    # (flash-style) logsumexp instead of a full-row tile.
    i = pl.program_id(0)
    j = pl.program_id(1)

    @pl.when(j == 0)
    def _():
        o_ref[...] = jnp.zeros_like(o_ref)

    x = x_ref[...].astype(jnp.float32)             # (TM, C)
    y = y_ref[...]                                 # (TM, 1) int32
    TM, C = x.shape

    row0 = (i * tiles_per_split + j) * TM
    row = row0 + jax.lax.broadcasted_iota(jnp.int32, (TM, 1), 0)
    valid = row < n_valid                          # (TM, 1)

    cls = jax.lax.broadcasted_iota(jnp.int32, (TM, C), 1)
    onehot = (cls == y).astype(jnp.float32)
    picked = jnp.sum(x * onehot, axis=1, keepdims=True)                      # (TM,1)
    m = jnp.max(x, axis=1, keepdims=True)
    lse = jnp.log(jnp.sum(jnp.exp(x - m), axis=1, keepdims=True)) + m
    ce_per = lse - picked

    yf = y.astype(jnp.float32)
    t = jnp.abs(x[:, C - 1:C] - yf)
    l1_per = jnp.where(yf < 1.0, t * w0, t * w1)

    zero = jnp.zeros_like(ce_per)
    masked = (a_over_n * jnp.where(valid, ce_per, zero)
              + b_over_n * jnp.where(valid, l1_per, zero))                   # (TM,1)
    contrib = jnp.sum(masked, axis=0, keepdims=True)                         # (1,1)
    o_ref[...] += jnp.broadcast_to(contrib, o_ref.shape)


def _pick_tile(n, requested, align):
    """Tile size: full extent if it fits, else an `align`-multiple + ragged tail."""
    tile = max(align, (int(requested) // align) * align)
    if n <= tile:
        return n, 1
    return tile, pl.cdiv(n, tile)


def ce_add_l1_loss(x, y, *, alpha=1.0, beta=1.0, weight=None,
                   block_rows=None, block_cols=None, small_c_threshold=8,
                   interpret=False):
    """x: (N, C) float logits; y: (N,) int class indices (also the L1 target)."""
    if weight is None:
        w0, w1 = 1.0, 1.0
    else:
        w0, w1 = float(weight[0]), float(weight[1])
        # TODO(synk): PyTorch CrossEntropyLoss(weight=...) also applies per-class
        # CE weights with a weighted mean; only the L1 weights are applied here
        # (matches the module's default weight=None path).
    N, C = x.shape
    a_over_n = float(alpha) / float(N)
    b_over_n = float(beta) / float(N)
    itemsize = jnp.dtype(x.dtype).itemsize

    cost = pl.CostEstimate(
        flops=8 * N * C + 8 * N,
        transcendentals=N * (C + 1),
        bytes_accessed=N * C * itemsize + N * 4,
    )

    if C <= small_c_threshold:
        # Lane-dense layout: classes on sublanes, batch samples on lanes.
        xt = x.T                                    # (C, N), native dtype
        yt = y.reshape(1, N).astype(jnp.int32)      # (1, N)
        tn, n_tiles = _pick_tile(N, 32768 if block_cols is None else block_cols,
                                 _LANE)
        num_splits = 2 if n_tiles >= 4 else 1
        tiles_per_split = pl.cdiv(n_tiles, num_splits)
        last_block = n_tiles - 1

        kernel = functools.partial(
            _small_c_kernel, a_over_n=a_over_n, b_over_n=b_over_n, w0=w0, w1=w1,
            n_valid=N, tiles_per_split=tiles_per_split)

        def data_map(i, j):
            return (0, jnp.minimum(i * tiles_per_split + j, last_block))

        in_specs = [pl.BlockSpec((C, tn), data_map),
                    pl.BlockSpec((1, tn), data_map)]
        operands = (xt, yt)
    else:
        # Row-tiled layout. Cap the x tile at ~4 MiB so double-buffering stays
        # well inside the scoped-VMEM budget on every generation (v7x: 64 MiB/TC).
        y2 = y.reshape(N, 1).astype(jnp.int32)
        rows_cap = max(32, ((4 << 20) // max(C * itemsize, 1)) // 32 * 32)
        default_rows = min(1024, rows_cap)
        tm, n_tiles = _pick_tile(N, default_rows if block_rows is None else block_rows,
                                 32)
        num_splits = 2 if n_tiles >= 4 else 1
        tiles_per_split = pl.cdiv(n_tiles, num_splits)
        last_block = n_tiles - 1

        kernel = functools.partial(
            _rows_kernel, a_over_n=a_over_n, b_over_n=b_over_n, w0=w0, w1=w1,
            n_valid=N, tiles_per_split=tiles_per_split)

        def data_map(i, j):
            return (jnp.minimum(i * tiles_per_split + j, last_block), 0)

        in_specs = [pl.BlockSpec((tm, C), data_map),
                    pl.BlockSpec((tm, 1), data_map)]
        operands = (x, y2)

    out = pl.pallas_call(
        kernel,
        out_shape=jax.ShapeDtypeStruct((num_splits, _SUBLANE, _LANE), jnp.float32),
        grid=(num_splits, tiles_per_split),
        in_specs=in_specs,
        out_specs=pl.BlockSpec((1, _SUBLANE, _LANE), lambda i, j: (i, 0, 0)),
        compiler_params=pltpu.CompilerParams(
            dimension_semantics=("parallel", "arbitrary"),
            vmem_limit_bytes=32 * 1024 * 1024,
        ),
        cost_estimate=cost,
        interpret=interpret,
    )(*operands)
    # Each split's (8,128) block is a replicated scalar partial sum.
    return jnp.sum(out[:, 0, 0])


def _reference(x, y, alpha=1.0, beta=1.0, w=(1.0, 1.0)):
    x = x.astype(jnp.float32)
    lse = jax.scipy.special.logsumexp(x, axis=-1)
    picked = jnp.take_along_axis(x, y[:, None].astype(jnp.int32), axis=-1)[:, 0]
    ce = jnp.mean(lse - picked)
    yf = y.astype(jnp.float32)
    t = jnp.abs(x[:, -1] - yf)
    l1 = jnp.mean(jnp.where(yf < 1.0, t * w[0], t * w[1]))
    return alpha * ce + beta * l1


if __name__ == "__main__":
    key = jax.random.PRNGKey(0)

    # (name, N, C, alpha, beta, extra kwargs) — small shapes; tiny tile overrides
    # exercise the multi-tile / dual-split / ragged-tail / clamped-tile paths.
    configs = [
        ("small_c_single_tile", 32, 2, 1.0, 1.0, {}),
        ("small_c_multi_tile_split", 520, 2, 0.5, 2.0, dict(block_cols=128)),
        ("rows_single_tile", 24, 16, 1.0, 1.0, {}),
        ("rows_multi_tile_split", 200, 16, 1.0, 1.0, dict(block_rows=32)),
    ]
    for idx, (name, n, c, alpha, beta, kw) in enumerate(configs):
        kx, ky = jax.random.split(jax.random.fold_in(key, idx))
        x = jax.random.normal(kx, (n, c), dtype=jnp.float32)
        y = jax.random.randint(ky, (n,), 0, c, dtype=jnp.int32)

        loss = jax.block_until_ready(ce_add_l1_loss(x, y, alpha=alpha, beta=beta, **kw))
        ref = _reference(x, y, alpha=alpha, beta=beta)
        assert jnp.allclose(loss, ref, rtol=2e-5, atol=2e-5), (name, loss, ref)

    print("KERNEL_OK")
</pallas_src>

<mosaic_0001>
module attributes {stable_mosaic.version = 11 : i64} {
  func.func @_small_c_kernel(%arg0: i32, %arg1: i32, %arg2: memref<2x32xf32, #tpu.memory_space<vmem>>, %arg3: memref<1x32xi32, #tpu.memory_space<vmem>>, %arg4: memref<1x8x128xf32, #tpu.memory_space<vmem>>) attributes {dimension_semantics = [#tpu.dimension_semantics<parallel>, #tpu.dimension_semantics<arbitrary>], iteration_bounds = array<i64: 1, 1>, scalar_prefetch = 0 : i64, scratch_operands = 0 : i64, tpu.core_type = #tpu.core_type<tc>, window_params = [{transform_indices = @transform_0, window_bounds = array<i64: 2, 32>}, {transform_indices = @transform_1, window_bounds = array<i64: 1, 32>}, {transform_indices = @transform_2, window_bounds = array<i64: 1, 8, 128>}]} {
    %c0_i32 = arith.constant 0 : i32
    %0 = arith.cmpi eq, %arg1, %c0_i32 : i32
    %1 = arith.extui %0 : i1 to i32
    %c0_i32_0 = arith.constant 0 : i32
    %2 = arith.cmpi ne, %1, %c0_i32_0 : i32
    scf.if %2 {
      %cst_21 = arith.constant 0.000000e+00 : f32
      %59 = vector.broadcast %cst_21 : f32 to vector<1x8x128xf32>
      %c0_22 = arith.constant 0 : index
      %c0_23 = arith.constant 0 : index
      %c0_24 = arith.constant 0 : index
      %60 = vector.load %arg4[%c0_22, %c0_23, %c0_24] : memref<1x8x128xf32, #tpu.memory_space<vmem>>, vector<1x8x128xf32>
      tpu.vector_store %arg4[%c0_22, %c0_23, %c0_24], %59 {strides = array<i32>} : memref<1x8x128xf32, #tpu.memory_space<vmem>>, vector<1x8x128xf32>,
    } else {
    }
    %c0 = arith.constant 0 : index
    %c0_1 = arith.constant 0 : index
    %3 = vector.load %arg2[%c0, %c0_1] : memref<2x32xf32, #tpu.memory_space<vmem>>, vector<2x32xf32>
    %c0_2 = arith.constant 0 : index
    %c0_3 = arith.constant 0 : index
    %4 = vector.load %arg3[%c0_2, %c0_3] : memref<1x32xi32, #tpu.memory_space<vmem>>, vector<1x32xi32>
    %c1_i32 = arith.constant 1 : i32
    %5 = arith.muli %arg0, %c1_i32 : i32
    %6 = arith.addi %5, %arg1 : i32
    %c32_i32 = arith.constant 32 : i32
    %7 = arith.muli %6, %c32_i32 : i32
    %8 = tpu.iota {dimensions = array<i32: 1>} : vector<1x32xi32>
    %9 = vector.broadcast %7 : i32 to vector<1x32xi32>
    %10 = arith.addi %9, %8 : vector<1x32xi32>
    %c32_i32_4 = arith.constant 32 : i32
    %11 = vector.broadcast %c32_i32_4 : i32 to vector<1x32xi32>
    %12 = arith.cmpi slt, %10, %11 : vector<1x32xi32>
    %cst = arith.constant dense<0xFF800000> : vector<32xf32>
    %13 = vector.multi_reduction <maximumf>, %3, %cst [0] : vector<2x32xf32> to vector<32xf32>
    %14 = vector.shape_cast %13 : vector<32xf32> to vector<1x32xf32>
    %15 = vector.broadcast %14 : vector<1x32xf32> to vector<2x32xf32>
    %16 = arith.subf %3, %15 : vector<2x32xf32>
    %17 = math.exp %16 : vector<2x32xf32>
    %cst_5 = arith.constant dense<0.000000e+00> : vector<32xf32>
    %18 = vector.multi_reduction <add>, %17, %cst_5 [0] : vector<2x32xf32> to vector<32xf32>
    %19 = vector.shape_cast %18 : vector<32xf32> to vector<1x32xf32>
    %20 = math.log %19 : vector<1x32xf32>
    %21 = arith.addf %20, %14 : vector<1x32xf32>
    %22 = tpu.iota {dimensions = array<i32: 0>} : vector<2x32xi32>
    %23 = vector.broadcast %4 : vector<1x32xi32> to vector<2x32xi32>
    %24 = arith.cmpi eq, %22, %23 : vector<2x32xi32>
    %25 = arith.extui %24 : vector<2x32xi1> to vector<2x32xi32>
    %26 = arith.sitofp %25 : vector<2x32xi32> to vector<2x32xf32>
    %27 = arith.mulf %3, %26 : vector<2x32xf32>
    %cst_6 = arith.constant dense<0.000000e+00> : vector<32xf32>
    %28 = vector.multi_reduction <add>, %27, %cst_6 [0] : vector<2x32xf32> to vector<32xf32>
    %29 = vector.shape_cast %28 : vector<32xf32> to vector<1x32xf32>
    %30 = arith.subf %21, %29 : vector<1x32xf32>
    %31 = arith.sitofp %4 : vector<1x32xi32> to vector<1x32xf32>
    %32 = vector.extract_strided_slice %3 {offsets = [1, 0], sizes = [1, 32], strides = [1, 1]} : vector<2x32xf32> to vector<1x32xf32>
    %33 = arith.subf %32, %31 : vector<1x32xf32>
    %34 = math.absf %33 : vector<1x32xf32>
    %cst_7 = arith.constant 1.000000e+00 : f32
    %35 = vector.broadcast %cst_7 : f32 to vector<1x32xf32>
    %36 = arith.cmpf olt, %31, %35 : vector<1x32xf32>
    %cst_8 = arith.constant 1.000000e+00 : f32
    %37 = vector.broadcast %cst_8 : f32 to vector<1x32xf32>
    %38 = arith.mulf %34, %37 : vector<1x32xf32>
    %cst_9 = arith.constant 1.000000e+00 : f32
    %39 = vector.broadcast %cst_9 : f32 to vector<1x32xf32>
    %40 = arith.mulf %34, %39 : vector<1x32xf32>
    %41 = arith.select %36, %38, %40 : vector<1x32xi1>, vector<1x32xf32>
    %cst_10 = arith.constant 0.000000e+00 : f32
    %42 = vector.broadcast %cst_10 : f32 to vector<1x32xf32>
    %43 = arith.select %12, %30, %42 : vector<1x32xi1>, vector<1x32xf32>
    %cst_11 = arith.constant dense<0.000000e+00> : vector<1xf32>
    %44 = vector.multi_reduction <add>, %43, %cst_11 [1] : vector<1x32xf32> to vector<1xf32>
    %45 = vector.shape_cast %44 : vector<1xf32> to vector<1x1xf32>
    %46 = arith.select %12, %41, %42 : vector<1x32xi1>, vector<1x32xf32>
    %cst_12 = arith.constant dense<0.000000e+00> : vector<1xf32>
    %47 = vector.multi_reduction <add>, %46, %cst_12 [1] : vector<1x32xf32> to vector<1xf32>
    %48 = vector.shape_cast %47 : vector<1xf32> to vector<1x1xf32>
    %cst_13 = arith.constant 3.125000e-02 : f32
    %49 = vector.broadcast %cst_13 : f32 to vector<1x1xf32>
    %50 = arith.mulf %49, %45 : vector<1x1xf32>
    %cst_14 = arith.constant 3.125000e-02 : f32
    %51 = vector.broadcast %cst_14 : f32 to vector<1x1xf32>
    %52 = arith.mulf %51, %48 : vector<1x1xf32>
    %53 = arith.addf %50, %52 : vector<1x1xf32>
    %c0_15 = arith.constant 0 : index
    %c0_16 = arith.constant 0 : index
    %c0_17 = arith.constant 0 : index
    %54 = vector.load %arg4[%c0_15, %c0_16, %c0_17] : memref<1x8x128xf32, #tpu.memory_space<vmem>>, vector<1x8x128xf32>
    %55 = vector.shape_cast %53 : vector<1x1xf32> to vector<1x1x1xf32>
    %56 = vector.broadcast %55 : vector<1x1x1xf32> to vector<1x8x128xf32>
    %57 = arith.addf %54, %56 : vector<1x8x128xf32>
    %c0_18 = arith.constant 0 : index
    %c0_19 = arith.constant 0 : index
    %c0_20 = arith.constant 0 : index
    %58 = vector.load %arg4[%c0_18, %c0_19, %c0_20] : memref<1x8x128xf32, #tpu.memory_space<vmem>>, vector<1x8x128xf32>
    tpu.vector_store %arg4[%c0_18, %c0_19, %c0_20], %57 {strides = array<i32>} : memref<1x8x128xf32, #tpu.memory_space<vmem>>, vector<1x8x128xf32>,
    return
  }
  func.func @transform_0(%arg0: i32, %arg1: i32) -> (i32, i32) {
    %c1_i32 = arith.constant 1 : i32
    %0 = arith.muli %arg0, %c1_i32 : i32
    %1 = arith.addi %0, %arg1 : i32
    %c0_i32 = arith.constant 0 : i32
    %2 = arith.minsi %1, %c0_i32 : i32
    %c0_i32_0 = arith.constant 0 : i32
    %c0_i32_1 = arith.constant 0 : i32
    return %c0_i32_0, %2 : i32, i32
  }
  func.func @transform_1(%arg0: i32, %arg1: i32) -> (i32, i32) {
    %c1_i32 = arith.constant 1 : i32
    %0 = arith.muli %arg0, %c1_i32 : i32
    %1 = arith.addi %0, %arg1 : i32
    %c0_i32 = arith.constant 0 : i32
    %2 = arith.minsi %1, %c0_i32 : i32
    %c0_i32_0 = arith.constant 0 : i32
    %c0_i32_1 = arith.constant 0 : i32
    return %c0_i32_0, %2 : i32, i32
  }
  func.func @transform_2(%arg0: i32, %arg1: i32) -> (i32, i32, i32) {
    %c0_i32 = arith.constant 0 : i32
    %c0_i32_0 = arith.constant 0 : i32
    %c0_i32_1 = arith.constant 0 : i32
    return %arg0, %c0_i32, %c0_i32_0 : i32, i32, i32
  }
}

</mosaic_0001>

<bundles_post_ra>
// kernel: tpu_custom_call.1
= control target key start
LH: loop header
LB: loop body
LE: loop exit
PB: predicated region body
PF: predicated region fallthrough
CT: control target
= control target key end

     0   :  { %7 = vsyncpa [#allocation3], 0  ;;  %s262_s0 = inlined_call_operand.hbm [shape: f32[2,32], index: 0, kind: input, shape index: {}]   ;;  %s263_s1 = inlined_call_operand.vmem [shape: s32[1,32], index: 1, kind: input, shape index: {}]   ;;  %s264_s2 = inlined_call_operand.hbm [shape: f32[1,8,128], index: 2, kind: output, shape index: {}]  }
   0x1   :  { %8 = vsyncpa [#allocation4], 0  ;;  %s214_s9 = smov [#allocation2]   ;;  %s166_s13 = scalar_lea.hbm %s262_s0, 32 }
   0x2   :  { %s20_s10 = sshll.u32 %s214_s9, 4  ;;  %p167_p0 = scmp.ne.s32.totalorder %s262_s0, %s166_s13  ;;  %s21_s10 = int_to_ptr.vmem [resolvable:$true] %s20_s10 }
   0x3   :  { %p170_p1 = scmp.lt.u32.totalorder %s166_s13, %s262_s0 }
   0x5   :  { %p172_p2 = pnand %p170_p1, %p167_p0 }
   0x7   :  { %175 = shalt.err (!%p172_p2)
}
   0x8   :  { %s176_s18 = scalar_lea.vmem %s21_s10, 32  ;;  %p181_p4 = scmp.lt.s32.totalorder %s21_s10, %s21_s10 }
   0x9   :  { %p177_p3 = scmp.ne.s32.totalorder %s21_s10, %s176_s18  ;;  %p182_p5 = scmp.lt.s32.totalorder %s176_s18, %s176_s18 }
   0xb   :  { %p183_p6 = por %p182_p5, %p181_p4 }
   0xd   :  { %p184_p7 = pnand %p183_p6, %p177_p3 }
   0xf   :  { %187 = shalt.err (!%p184_p7)
}
  0x10   :  { %23 = dma.hbm_to_vmem [thread:$0]  %s262_s0, 32, %s21_s10, [#allocation3]  }
  0x11   :  { %210 = dma.done.wait [#allocation3], 32  }
  0x12   :  { %211 = vsyncadd [#allocation3], 4294967264  ;;  %vm70_vm0 = vcmask 254976   ;;  %v61_v0 = vld [vmem:[#allocation2] sm:$0x3]  ;;  %v65_v3 = vlaneseq  ;;  %v215_v15 = vmov 0.0  }
  0x13   :  { %v71_v1 = vsel %vm70_vm0, %v61_v0, -inf  ;;  %v62_v11 = vld [vmem:[%s263_s1] sm:$0x1]  ;;  %vm119_vm3 = vcmask 261120   ;;  %vm124_vm4 = vcmask 254977   ;;  %s216_s0 = smov [#allocation5]  }
  0x14   :  { %v72_v2 = vrot.slane %v71_v1, 4  ;;  %v92_v7 = vshrl.u32 %v65_v3, 7  ;;  %v109_v30 = vcvt.s32.f32 %v62_v11  ;;  %v66_v36 = vand.u32 127, %v65_v3  ;;  %s144_s1 = sshll.u32 %s216_s0, 4  ;;  %s145_s1 = int_to_ptr.vmem [resolvable:$true] %s144_s1 }
  0x15   :  { %s188_s23 = scalar_lea.vmem %s145_s1, 128  ;;  %p193_p9 = scmp.lt.s32.totalorder %s145_s1, %s145_s1 }
  0x16   :  { %v73_v4 = vmax.f32 %v71_v1, %v72_v2  ;;  %v95_v10 = vsub.s32 0, %v92_v7  ;;  %vm69_vm2 = vcmp.lt.s32.totalorder %v66_v36, 32  ;;  %v134_v49 = vsub.s32 1, %v92_v7  ;;  %p189_p8 = scmp.ne.s32.totalorder %s145_s1, %s188_s23  ;;  %p194_p10 = scmp.lt.s32.totalorder %s188_s23, %s188_s23 }
  0x18   :  { %v74_v5 = vrot.slane %v73_v4, 2  ;;  %v96_v14 = vrot.slane %v62_v11, %v95_v10  ;;  %v114_v32 = vrot.slane %v109_v30, %v95_v10  ;;  %p195_p11 = por %p194_p10, %p193_p9 }
  0x1a   :  { %v75_v6 = vmax.f32 %v73_v4, %v74_v5  ;;  %vm97_vm1 = vcmp.eq.s32.totalorder %v92_v7, %v96_v14  ;;  %v116_v34 = vsub.f32 %v61_v0, %v114_v32  ;;  %p196_p12 = pnand %p195_p11, %p189_p8 }
  0x1b   :  { %v158_v16 = vsel %vm97_vm1, 1.0, %v215_v15 }
  0x1c   :  { %v76_v8 = vrot.slane %v75_v6, 1  ;;  %v100_v17 = vmul.f32 %v158_v16, %v61_v0  ;;  %v117_v40 = vand.u32 2147483647, %v116_v34 }
  0x1e   :  { %v77_v9 = vmax.f32 %v75_v6, %v76_v8  ;;  %v101_v21 = vsel %vm70_vm0, %v100_v17, 0.0  ;;  %v123_v43 = vsel %vm69_vm2, %v117_v40, 0.0 }
  0x1f   :  { %v102_v23 = vrot.slane %v101_v21, 4  ;;  %v125_v45 = vsel %vm124_vm4, %v123_v43, 0.0 }
  0x20   :  { %v78_v12 = vsub.f32 %v61_v0, %v77_v9 }
  0x21   :  { %v103_v26 = vadd.f32 %v102_v23, %v101_v21 }
  0x22   :  { %v79_v13 = vmul.f32 1.442695, %v78_v12 }
  0x23   :  { %v104_v29 = vrot.slane %v103_v26, 2 }
  0x24   :  { %162 = vpow2.f32 %v79_v13 }
  0x25   :  { %v105_v31 = vadd.f32 %v104_v29, %v103_v26 }
  0x27   :  { %v106_v33 = vrot.slane %v105_v31, 1 }
  0x29   :  { %v107_v38 = vadd.f32 %v106_v33, %v105_v31 }
  0x2e   :  { %v163_v18 = vpop.eup %162 }
  0x2f   :  { %v81_v19 = vsel %vm70_vm0, %v163_v18, 0.0 }
  0x30   :  { %v82_v20 = vrot.slane %v81_v19, 4 }
  0x32   :  { %v83_v22 = vadd.f32 %v82_v20, %v81_v19 }
  0x34   :  { %v84_v24 = vrot.slane %v83_v22, 2 }
  0x36   :  { %v85_v25 = vadd.f32 %v84_v24, %v83_v22 }
  0x38   :  { %v86_v27 = vrot.slane %v85_v25, 1 }
  0x3a   :  { %v87_v28 = vadd.f32 %v86_v27, %v85_v25 }
  0x3c   :  { %164 = vlog2.f32 %v87_v28 }
  0x46   :  { %v165_v35 = vpop.eup %164 }
  0x47   :  { %v89_v37 = vmul.f32 0.6931472, %v165_v35 }
  0x49   :  { %v90_v39 = vadd.f32 %v89_v37, %v77_v9 }
  0x4b   :  { %v108_v41 = vsub.f32 %v90_v39, %v107_v38 }
  0x4d   :  { %v118_v42 = vsel %vm69_vm2, %v108_v41, 0.0 }
  0x4e   :  { %v120_v44 = vsel %vm119_vm3, %v118_v42, 0.0 }
  0x4f   :  { %121 = vadd.xlane.f32.xlu0 %v120_v44 }
  0x53   :  { %126 = vadd.xlane.f32.xlu0 %v125_v45 }
  0xdc   :  { %v122_v46 = vpop.xlane.xlu0 %121 }
  0xdd   :  { %v128_v48 = vmul.f32 0.03125, %v122_v46 }
  0xe0   :  { %v127_v47 = vpop.xlane.xlu0 %126 }
  0xe1   :  { %v129_v50 = vmul.f32 0.03125, %v127_v47 }
  0xe3   :  { %v130_v51 = vadd.f32 %v129_v50, %v128_v48 }
  0xe5   :  { %v135_v52 = vrot.slane %v130_v51, %v134_v49 }
  0xe7   :  { %137 = vst [vmem:[#allocation5] sm:$0xff] %v135_v52 }
  0xe8   :  { %199 = shalt.err (!%p196_p12)
}
  0xe9   :  { %s200_s26 = scalar_lea.hbm %s264_s2, 128 }
  0xea   :  { %p201_p13 = scmp.ne.s32.totalorder %s264_s2, %s200_s26  ;;  %p204_p0 = scmp.lt.u32.totalorder %s200_s26, %s264_s2 }
  0xec   :  { %p206_p1 = pnand %p204_p0, %p201_p13 }
  0xee   :  { %209 = shalt.err (!%p206_p1)
}
  0xef   :  { %147 = dma.vmem_to_hbm [thread:$0]  %s145_s1, 128, %s264_s2, [#allocation4]  }
  0xf0   :  { %212 = dma.done.wait [#allocation4], 128  }
  0xf1   :  { %213 = vsyncadd [#allocation4], 4294967168 }
  0xf2   :  { %151 = vsyncpa [#allocation3], 1 }
  0xf3   :  { %152 = vsyncpa [#allocation4], 1 }

</bundles_post_ra>
